<compile_context>
chip_gen: v7x
topology: tpu7x:2x2x1
jax: 0.10.0
libtpu: 0.0.40
codegen_flags: <defaults>
</compile_context>

<pallas_src>
import jax
import jax.numpy as jnp
from jax.experimental import pallas as pl
from jax.experimental.pallas import tpu as pltpu

_TARGET_TILE_BYTES = 3 * 1024 * 1024   # per-input VMEM buffer target (padded rows)
_VMEM_LIMIT_BYTES = 32 * 1024 * 1024   # <= physical VMEM on all generations


def _round_up(x, m):
    return -(-x // m) * m


def _make_iou_kernel(*, n, tn, chunk, k_steps, tile_b):
    """Builds the kernel for static sizes n (true cols), tn (block cols), etc."""
    full_chunks = tn // chunk
    tail = tn - full_chunks * chunk          # nonzero only when tn == n
    ragged = (tn < n) and (n % tn != 0)      # last column tile has OOB lanes

    def kernel(pred_ref, target_ref, iand_ref, isum_ref, iand_acc, isum_acc):
        k_idx = pl.program_id(2)

        @pl.when(k_idx == 0)
        def _init():
            iand_acc[...] = jnp.zeros_like(iand_acc)
            isum_acc[...] = jnp.zeros_like(isum_acc)

        if ragged:
            s_idx = pl.program_id(1)
            col_base = (s_idx * k_steps + k_idx) * tn          # scalar
            lane = jax.lax.broadcasted_iota(jnp.int32, (tile_b, chunk), 1)

        def accumulate(p, t, valid):
            p = p.astype(jnp.float32)
            t = t.astype(jnp.float32)
            if valid is not None:
                # Mandatory: OOB lanes of a partial edge block are undefined.
                p = jnp.where(valid, p, 0.0)
                t = jnp.where(valid, t, 0.0)
            iand_acc[...] += jnp.sum(t * p, axis=-1, keepdims=True)
            isum_acc[...] += jnp.sum(t + p, axis=-1, keepdims=True)

        if full_chunks > 0:
            def chunk_body(c, carry):
                start = pl.multiple_of(c * chunk, chunk)
                p = pred_ref[:, pl.ds(start, chunk)]
                t = target_ref[:, pl.ds(start, chunk)]
                valid = (col_base + c * chunk + lane) < n if ragged else None
                accumulate(p, t, valid)
                return carry

            jax.lax.fori_loop(0, full_chunks, chunk_body, 0)

        if tail > 0:
            # Only happens when tn == n (no ragged lanes possible).
            start = full_chunks * chunk
            accumulate(pred_ref[:, pl.ds(start, tail)],
                       target_ref[:, pl.ds(start, tail)], None)

        @pl.when(k_idx == pl.num_programs(2) - 1)
        def _finalize():
            iand_ref[...] = iand_acc[...][None]   # (1, tile_b, 1)
            isum_ref[...] = isum_acc[...][None]

    return kernel


def iou_loss(pred, target):
    """Equivalent of IOU().forward(pred, target) for NCHW (or any N,...) inputs."""
    assert pred.shape == target.shape
    b = pred.shape[0]
    n = 1
    for d in pred.shape[1:]:
        n *= d

    itemsize = pred.dtype.itemsize
    base = {4: 8, 2: 16, 1: 32}.get(itemsize, 8)    # dtype-aware sublane tile

    # Row tile: full batch if tiny, else a multiple of `base`, grown for big b.
    if b <= base:
        tile_b = b                                   # == full dim -> legal block
    else:
        tile_b = base
        while tile_b * 2 <= 64 and b >= 4 * tile_b:  # keep >=2 row tiles
            tile_b *= 2

    rows_padded = _round_up(max(tile_b, 1), base)    # VMEM/vreg footprint rows

    # Inner reduction chunk: <= ~16K f32 elements live per operand.
    chunk = max(128, min(4096, (16384 // rows_padded) // 128 * 128))

    # Column tile: target ~3 MiB per (padded) input buffer, multiple of chunk.
    tn_cap = max(chunk,
                 (_TARGET_TILE_BYTES // (rows_padded * itemsize)) // chunk * chunk)
    tn = n if n <= tn_cap else tn_cap

    total_k = -(-n // tn)
    grid_i = -(-b // tile_b)

    # Split the reduction axis in two "parallel" halves when the batch axis
    # can't feed both v7x TensorCores (only when tiles split evenly).
    if grid_i < 2 and total_k >= 2 and total_k % 2 == 0:
        n_splits, k_steps = 2, total_k // 2
    else:
        n_splits, k_steps = 1, total_k

    pred2d = pred.reshape(b, n)
    target2d = target.reshape(b, n)

    kernel = _make_iou_kernel(n=n, tn=tn, chunk=chunk, k_steps=k_steps,
                              tile_b=tile_b)

    def in_map(i, s, k):
        return (i, s * k_steps + k)

    def out_map(i, s, k):
        return (s, i, 0)

    out_shape = (jax.ShapeDtypeStruct((n_splits, b, 1), jnp.float32),
                 jax.ShapeDtypeStruct((n_splits, b, 1), jnp.float32))

    iand_parts, isum_parts = pl.pallas_call(
        kernel,
        out_shape=out_shape,
        grid_spec=pltpu.PrefetchScalarGridSpec(
            num_scalar_prefetch=0,
            grid=(grid_i, n_splits, k_steps),
            in_specs=[
                pl.BlockSpec((tile_b, tn), in_map),
                pl.BlockSpec((tile_b, tn), in_map),
            ],
            out_specs=(
                pl.BlockSpec((1, tile_b, 1), out_map),
                pl.BlockSpec((1, tile_b, 1), out_map),
            ),
            scratch_shapes=[
                pltpu.VMEM((tile_b, 1), jnp.float32),
                pltpu.VMEM((tile_b, 1), jnp.float32),
            ],
        ),
        compiler_params=pltpu.CompilerParams(
            dimension_semantics=("parallel", "parallel", "arbitrary"),
            vmem_limit_bytes=_VMEM_LIMIT_BYTES,
        ),
        cost_estimate=pl.CostEstimate(
            flops=3 * b * n,
            transcendentals=0,
            bytes_accessed=2 * b * n * itemsize + 8 * b * n_splits,
        ),
    )(pred2d, target2d)

    # Combine split partials and compute the loss (tiny, stays in JAX).
    iand = jnp.sum(iand_parts[:, :, 0], axis=0)           # (b,)
    ior = jnp.sum(isum_parts[:, :, 0], axis=0) - iand     # (b,)
    eps = jnp.float32(1e-6)
    per_sample = jnp.float32(1.0) - (iand + eps) / (ior + eps)
    return jnp.sum(per_sample) / jnp.float32(b)


def _iou_ref(pred, target):
    # Pure-JAX reference mirroring the PyTorch _iou loop.
    b = pred.shape[0]
    k = 1e-6
    total = 0.0
    for i in range(b):
        iand = jnp.sum(target[i] * pred[i])
        ior = jnp.sum(target[i]) + jnp.sum(pred[i]) - iand
        total += 1.0 - (iand + k) / (ior + k)
    return total / b


if __name__ == "__main__":
    key = jax.random.PRNGKey(0)
    k1, k2 = jax.random.split(key)
    B, C, H, W = 2, 4, 16, 16

    # Predictions / targets in [0, 1] as is typical for saliency-style IoU loss.
    pred = jax.nn.sigmoid(jax.random.normal(k1, (B, C, H, W), dtype=jnp.float32))
    target = (jax.random.uniform(k2, (B, C, H, W)) > 0.5).astype(jnp.float32)

    out = iou_loss(pred, target)
    out = jax.block_until_ready(out)

    ref = _iou_ref(pred, target)
    assert jnp.allclose(out, ref, rtol=1e-5, atol=1e-6), (out, ref)

    print("KERNEL_OK")
</pallas_src>

<mosaic_0001>
module attributes {stable_mosaic.version = 11 : i64} {
  func.func @kernel(%arg0: i32, %arg1: i32, %arg2: i32, %arg3: memref<2x1024xf32, #tpu.memory_space<vmem>>, %arg4: memref<2x1024xf32, #tpu.memory_space<vmem>>, %arg5: memref<1x2x1xf32, #tpu.memory_space<vmem>>, %arg6: memref<1x2x1xf32, #tpu.memory_space<vmem>>, %arg7: memref<2x1xf32, #tpu.memory_space<vmem>>, %arg8: memref<2x1xf32, #tpu.memory_space<vmem>>) attributes {dimension_semantics = [#tpu.dimension_semantics<parallel>, #tpu.dimension_semantics<parallel>, #tpu.dimension_semantics<arbitrary>], iteration_bounds = array<i64: 1, 1, 1>, scalar_prefetch = 0 : i64, scratch_operands = 2 : i64, tpu.core_type = #tpu.core_type<tc>, window_params = [{transform_indices = @transform_0, window_bounds = array<i64: 2, 1024>}, {transform_indices = @transform_1, window_bounds = array<i64: 2, 1024>}, {transform_indices = @transform_2, window_bounds = array<i64: 1, 2, 1>}, {transform_indices = @transform_3, window_bounds = array<i64: 1, 2, 1>}]} {
    %c0_i32 = arith.constant 0 : i32
    %0 = arith.cmpi eq, %arg2, %c0_i32 : i32
    %1 = arith.extui %0 : i1 to i32
    %c0_i32_0 = arith.constant 0 : i32
    %2 = arith.cmpi ne, %1, %c0_i32_0 : i32
    scf.if %2 {
      %cst_15 = arith.constant 0.000000e+00 : f32
      %20 = vector.broadcast %cst_15 : f32 to vector<2x1xf32>
      %c0_16 = arith.constant 0 : index
      %c0_17 = arith.constant 0 : index
      %21 = vector.load %arg7[%c0_16, %c0_17] : memref<2x1xf32, #tpu.memory_space<vmem>>, vector<2x1xf32>
      tpu.vector_store %arg7[%c0_16, %c0_17], %20 {strides = array<i32>} : memref<2x1xf32, #tpu.memory_space<vmem>>, vector<2x1xf32>,
      %cst_18 = arith.constant 0.000000e+00 : f32
      %22 = vector.broadcast %cst_18 : f32 to vector<2x1xf32>
      %c0_19 = arith.constant 0 : index
      %c0_20 = arith.constant 0 : index
      %23 = vector.load %arg8[%c0_19, %c0_20] : memref<2x1xf32, #tpu.memory_space<vmem>>, vector<2x1xf32>
      tpu.vector_store %arg8[%c0_19, %c0_20], %22 {strides = array<i32>} : memref<2x1xf32, #tpu.memory_space<vmem>>, vector<2x1xf32>,
    } else {
    }
    %c0 = arith.constant 0 : index
    %c0_1 = arith.constant 0 : index
    %3 = vector.load %arg3[%c0, %c0_1] : memref<2x1024xf32, #tpu.memory_space<vmem>>, vector<2x1024xf32>
    %c0_2 = arith.constant 0 : index
    %c0_3 = arith.constant 0 : index
    %4 = vector.load %arg4[%c0_2, %c0_3] : memref<2x1024xf32, #tpu.memory_space<vmem>>, vector<2x1024xf32>
    %c0_4 = arith.constant 0 : index
    %c0_5 = arith.constant 0 : index
    %5 = vector.load %arg7[%c0_4, %c0_5] : memref<2x1xf32, #tpu.memory_space<vmem>>, vector<2x1xf32>
    %6 = arith.mulf %4, %3 : vector<2x1024xf32>
    %cst = arith.constant dense<0.000000e+00> : vector<2xf32>
    %7 = vector.multi_reduction <add>, %6, %cst [1] : vector<2x1024xf32> to vector<2xf32>
    %8 = vector.shape_cast %7 : vector<2xf32> to vector<2x1xf32>
    %9 = arith.addf %5, %8 : vector<2x1xf32>
    %c0_6 = arith.constant 0 : index
    %c0_7 = arith.constant 0 : index
    %10 = vector.load %arg7[%c0_6, %c0_7] : memref<2x1xf32, #tpu.memory_space<vmem>>, vector<2x1xf32>
    tpu.vector_store %arg7[%c0_6, %c0_7], %9 {strides = array<i32>} : memref<2x1xf32, #tpu.memory_space<vmem>>, vector<2x1xf32>,
    %c0_8 = arith.constant 0 : index
    %c0_9 = arith.constant 0 : index
    %11 = vector.load %arg8[%c0_8, %c0_9] : memref<2x1xf32, #tpu.memory_space<vmem>>, vector<2x1xf32>
    %12 = arith.addf %4, %3 : vector<2x1024xf32>
    %cst_10 = arith.constant dense<0.000000e+00> : vector<2xf32>
    %13 = vector.multi_reduction <add>, %12, %cst_10 [1] : vector<2x1024xf32> to vector<2xf32>
    %14 = vector.shape_cast %13 : vector<2xf32> to vector<2x1xf32>
    %15 = arith.addf %11, %14 : vector<2x1xf32>
    %c0_11 = arith.constant 0 : index
    %c0_12 = arith.constant 0 : index
    %16 = vector.load %arg8[%c0_11, %c0_12] : memref<2x1xf32, #tpu.memory_space<vmem>>, vector<2x1xf32>
    tpu.vector_store %arg8[%c0_11, %c0_12], %15 {strides = array<i32>} : memref<2x1xf32, #tpu.memory_space<vmem>>, vector<2x1xf32>,
    %c0_i32_13 = arith.constant 0 : i32
    %17 = arith.cmpi eq, %arg2, %c0_i32_13 : i32
    %18 = arith.extui %17 : i1 to i32
    %c0_i32_14 = arith.constant 0 : i32
    %19 = arith.cmpi ne, %18, %c0_i32_14 : i32
    scf.if %19 {
      %c0_15 = arith.constant 0 : index
      %c0_16 = arith.constant 0 : index
      %20 = vector.load %arg7[%c0_15, %c0_16] : memref<2x1xf32, #tpu.memory_space<vmem>>, vector<2x1xf32>
      %21 = vector.shape_cast %20 : vector<2x1xf32> to vector<1x2x1xf32>
      %c0_17 = arith.constant 0 : index
      %c0_18 = arith.constant 0 : index
      %c0_19 = arith.constant 0 : index
      %22 = vector.load %arg5[%c0_17, %c0_18, %c0_19] : memref<1x2x1xf32, #tpu.memory_space<vmem>>, vector<1x2x1xf32>
      tpu.vector_store %arg5[%c0_17, %c0_18, %c0_19], %21 {strides = array<i32>} : memref<1x2x1xf32, #tpu.memory_space<vmem>>, vector<1x2x1xf32>,
      %c0_20 = arith.constant 0 : index
      %c0_21 = arith.constant 0 : index
      %23 = vector.load %arg8[%c0_20, %c0_21] : memref<2x1xf32, #tpu.memory_space<vmem>>, vector<2x1xf32>
      %24 = vector.shape_cast %23 : vector<2x1xf32> to vector<1x2x1xf32>
      %c0_22 = arith.constant 0 : index
      %c0_23 = arith.constant 0 : index
      %c0_24 = arith.constant 0 : index
      %25 = vector.load %arg6[%c0_22, %c0_23, %c0_24] : memref<1x2x1xf32, #tpu.memory_space<vmem>>, vector<1x2x1xf32>
      tpu.vector_store %arg6[%c0_22, %c0_23, %c0_24], %24 {strides = array<i32>} : memref<1x2x1xf32, #tpu.memory_space<vmem>>, vector<1x2x1xf32>,
    } else {
    }
    return
  }
  func.func @transform_0(%arg0: i32, %arg1: i32, %arg2: i32) -> (i32, i32) {
    %c1_i32 = arith.constant 1 : i32
    %0 = arith.muli %arg1, %c1_i32 : i32
    %1 = arith.addi %0, %arg2 : i32
    %c0_i32 = arith.constant 0 : i32
    return %arg0, %1 : i32, i32
  }
  func.func @transform_1(%arg0: i32, %arg1: i32, %arg2: i32) -> (i32, i32) {
    %c1_i32 = arith.constant 1 : i32
    %0 = arith.muli %arg1, %c1_i32 : i32
    %1 = arith.addi %0, %arg2 : i32
    %c0_i32 = arith.constant 0 : i32
    return %arg0, %1 : i32, i32
  }
  func.func @transform_2(%arg0: i32, %arg1: i32, %arg2: i32) -> (i32, i32, i32) {
    %c0_i32 = arith.constant 0 : i32
    %c0_i32_0 = arith.constant 0 : i32
    return %arg1, %arg0, %c0_i32 : i32, i32, i32
  }
  func.func @transform_3(%arg0: i32, %arg1: i32, %arg2: i32) -> (i32, i32, i32) {
    %c0_i32 = arith.constant 0 : i32
    %c0_i32_0 = arith.constant 0 : i32
    return %arg1, %arg0, %c0_i32 : i32, i32, i32
  }
}

</mosaic_0001>

<bundles_post_ra>
// kernel: tpu_custom_call.1
= control target key start
LH: loop header
LB: loop body
LE: loop exit
PB: predicated region body
PF: predicated region fallthrough
CT: control target
= control target key end

     0   :  { %9 = vsyncpa [#allocation5], 0  ;;  %s339_s0 = inlined_call_operand.hbm [shape: f32[2,1024], index: 0, kind: input, shape index: {}]   ;;  %s340_s1 = inlined_call_operand.hbm [shape: f32[2,1024], index: 1, kind: input, shape index: {}]   ;;  %s341_s2 = inlined_call_operand.vmem [shape: f32[1,2,1], index: 2, kind: output, shape index: {0}]   ;;  %s342_s3 = inlined_call_operand.vmem [shape: f32[1,2,1], index: 3, kind: output, shape index: {1}]  }
   0x1   :  { %10 = vsyncpa [#allocation7], 0  ;;  %s263_s12 = smov [#allocation4]   ;;  %s264_s14 = smov [#allocation6]  }
   0x2   :  { %s21_s13 = sshll.u32 %s263_s12, 4  ;;  %s35_s15 = sshll.u32 %s264_s14, 4  ;;  %s22_s13 = int_to_ptr.vmem [resolvable:$true] %s21_s13  ;;  %s36_s15 = int_to_ptr.vmem [resolvable:$true] %s35_s15 }
   0x3   :  { %s215_s18 = scalar_lea.hbm %s339_s0, 256 }
   0x4   :  { %p216_p0 = scmp.ne.s32.totalorder %s339_s0, %s215_s18  ;;  %p219_p1 = scmp.lt.u32.totalorder %s215_s18, %s339_s0 }
   0x6   :  { %p221_p2 = pnand %p219_p1, %p216_p0 }
   0x8   :  { %224 = shalt.err (!%p221_p2)
}
   0x9   :  { %s225_s23 = scalar_lea.vmem %s22_s13, 256  ;;  %p230_p4 = scmp.lt.s32.totalorder %s22_s13, %s22_s13 }
   0xa   :  { %p226_p3 = scmp.ne.s32.totalorder %s22_s13, %s225_s23  ;;  %p231_p5 = scmp.lt.s32.totalorder %s225_s23, %s225_s23 }
   0xc   :  { %p232_p6 = por %p231_p5, %p230_p4 }
   0xe   :  { %p233_p7 = pnand %p232_p6, %p226_p3 }
  0x10   :  { %236 = shalt.err (!%p233_p7)
}
  0x11   :  { %24 = dma.hbm_to_vmem [thread:$0]  %s339_s0, 256, %s22_s13, [#allocation5]  }
  0x12   :  { %s237_s28 = scalar_lea.hbm %s340_s1, 256 }
  0x13   :  { %p238_p8 = scmp.ne.s32.totalorder %s340_s1, %s237_s28  ;;  %p241_p9 = scmp.lt.u32.totalorder %s237_s28, %s340_s1 }
  0x15   :  { %p243_p10 = pnand %p241_p9, %p238_p8 }
  0x17   :  { %246 = shalt.err (!%p243_p10)
}
  0x18   :  { %s247_s6 = scalar_lea.vmem %s36_s15, 256  ;;  %p252_p12 = scmp.lt.s32.totalorder %s36_s15, %s36_s15 }
  0x19   :  { %p248_p11 = scmp.ne.s32.totalorder %s36_s15, %s247_s6  ;;  %p253_p13 = scmp.lt.s32.totalorder %s247_s6, %s247_s6 }
  0x1b   :  { %p254_p0 = por %p253_p13, %p252_p12 }
  0x1d   :  { %p255_p1 = pnand %p254_p0, %p248_p11 }
  0x1f   :  { %258 = shalt.err (!%p255_p1)
}
  0x20   :  { %38 = dma.hbm_to_vmem [thread:$0]  %s340_s1, 256, %s36_s15, [#allocation7]  }
  0x21   :  { %259 = dma.done.wait [#allocation5], 256  }
  0x22   :  { %260 = vsyncadd [#allocation5], 4294967040 }
  0x23   :  { %261 = dma.done.wait [#allocation7], 256  }
  0x24   :  { %262 = vsyncadd [#allocation7], 4294967040  ;;  %v69_v0 = vlaneseq  ;;  %vm53_vm0 = vcmask 1024   ;;  %v265_v1 = vmov 1983009808   ;;  %v266_v4 = vmov 0.0  }
  0x25   :  { %v67_v2 = vunpack.c.l.s4 %v265_v1  ;;  %54 = vst.msk [vmem:[#allocation2] sm:$0x3] %vm53_vm0, %v266_v4  ;;  %55 = vst.msk [vmem:[#allocation3] sm:$0x3] %vm53_vm0, %v266_v4  ;;  %v56_v7 = vld [vmem:[#allocation4] sm:$0xff]  ;;  %v57_v8 = vld [vmem:[#allocation4 + $0x8] sm:$0xff] }
  0x26   :  { %v70_v3 = vshrl.u32 %v69_v0, 7  ;;  %v58_v9 = vld [vmem:[#allocation6] sm:$0xff]  ;;  %v59_v10 = vld [vmem:[#allocation6 + $0x8] sm:$0xff]  ;;  %vm107_vm1 = vcmask 1041408  }
  0x27   :  { %v68_v5 = vunpack.c.0.s8 %v67_v2  ;;  %v61_v11 = vmul.f32 %v58_v9, %v56_v7  ;;  %v129_v12 = vadd.f32 %v58_v9, %v56_v7  ;;  %v62_v13 = vmul.f32 %v59_v10, %v57_v8 }
  0x28   :  { %v130_v20 = vadd.f32 %v59_v10, %v57_v8 }
  0x29   :  { %v71_v6 = vsub.s32 %v68_v5, %v70_v3  ;;  %v65_v14 = vcombine.high %v61_v11, %v61_v11  ;;  %v133_v16 = vcombine.high %v129_v12, %v129_v12  ;;  %v82_v18 = vcombine.high %v62_v13, %v62_v13 }
  0x2a   :  { %v150_v31 = vcombine.high %v130_v20, %v130_v20 }
  0x2b   :  { %v72_v15 = vrot.slane %v61_v11, %v71_v6  ;;  %v140_v17 = vrot.slane %v129_v12, %v71_v6  ;;  %v89_v19 = vrot.slane %v62_v13, %v71_v6  ;;  %v79_v21 = vrot.slane %v65_v14, %v71_v6 }
  0x2c   :  { %v147_v24 = vrot.slane %v133_v16, %v71_v6  ;;  %v157_v32 = vrot.slane %v130_v20, %v71_v6  ;;  %v96_v33 = vrot.slane %v82_v18, %v71_v6  ;;  %v164_v43 = vrot.slane %v150_v31, %v71_v6  ;;  %v60_v1 = vld [vmem:[#allocation2] sm:$0x3]  ;;  %v128_v4 = vld [vmem:[#allocation3] sm:$0x3] }
  0x2d   :  { %v80_v22 = vcombine.high %v72_v15, %v72_v15  ;;  %v108_v23 = vsel %vm107_vm1, %v72_v15, 0.0  ;;  %v148_v25 = vcombine.high %v140_v17, %v140_v17  ;;  %v81_v26 = vcombine.high %v79_v21, %v79_v21 }
  0x2e   :  { %v111_v28 = vsel %vm107_vm1, %v79_v21, 0.0  ;;  %v149_v30 = vcombine.high %v147_v24, %v147_v24  ;;  %v97_v34 = vcombine.high %v89_v19, %v89_v19  ;;  %v175_v36 = vsel %vm107_vm1, %v140_v17, 0.0 }
  0x2f   :  { %v109_v27 = vsel %vm107_vm1, %v80_v22, 0.0  ;;  %v113_v35 = vsel %vm107_vm1, %v81_v26, 0.0  ;;  %v176_v38 = vsel %vm107_vm1, %v148_v25, 0.0  ;;  %v178_v39 = vsel %vm107_vm1, %v147_v24, 0.0 }
  0x30   :  { %v110_v29 = vadd.f32 %v109_v27, %v108_v23  ;;  %v115_v40 = vsel %vm107_vm1, %v89_v19, 0.0  ;;  %v177_v41 = vadd.f32 %v176_v38, %v175_v36  ;;  %v165_v44 = vcombine.high %v157_v32, %v157_v32 }
  0x31   :  { %v180_v45 = vsel %vm107_vm1, %v149_v30, 0.0  ;;  %v98_v46 = vcombine.high %v96_v33, %v96_v33  ;;  %v117_v47 = vsel %vm107_vm1, %v97_v34, 0.0  ;;  %v182_v50 = vsel %vm107_vm1, %v157_v32, 0.0 }
  0x32   :  { %v112_v37 = vadd.f32 %v111_v28, %v110_v29  ;;  %v179_v48 = vadd.f32 %v178_v39, %v177_v41  ;;  %v119_v51 = vsel %vm107_vm1, %v96_v33, 0.0  ;;  %v166_v54 = vcombine.high %v164_v43, %v164_v43 }
  0x33   :  { %v184_v55 = vsel %vm107_vm1, %v165_v44, 0.0  ;;  %v121_v56 = vsel %vm107_vm1, %v98_v46, 0.0  ;;  %v186_v59 = vsel %vm107_vm1, %v164_v43, 0.0 }
  0x34   :  { %v114_v42 = vadd.f32 %v113_v35, %v112_v37  ;;  %v181_v52 = vadd.f32 %v180_v45, %v179_v48  ;;  %v188_v62 = vsel %vm107_vm1, %v166_v54, 0.0 }
  0x36   :  { %v116_v49 = vadd.f32 %v115_v40, %v114_v42  ;;  %v183_v57 = vadd.f32 %v182_v50, %v181_v52 }
  0x38   :  { %v118_v53 = vadd.f32 %v117_v47, %v116_v49  ;;  %v185_v60 = vadd.f32 %v184_v55, %v183_v57 }
  0x3a   :  { %v120_v58 = vadd.f32 %v119_v51, %v118_v53  ;;  %v187_v63 = vadd.f32 %v186_v59, %v185_v60 }
  0x3c   :  { %v122_v61 = vadd.f32 %v121_v56, %v120_v58  ;;  %v189_v0 = vadd.f32 %v188_v62, %v187_v63 }
  0x3e   :  { %123 = vadd.xlane.f32.xlu0 %v122_v61 }
  0x42   :  { %190 = vadd.xlane.f32.xlu0 %v189_v0 }
  0xcb   :  { %v124_v2 = vpop.xlane.xlu0 %123 }
  0xcc   :  { %v125_v3 = vadd.f32 %v124_v2, %v60_v1 }
  0xce   :  { %127 = vst.msk [vmem:[#allocation2] sm:$0x3] %vm53_vm0, %v125_v3 }
  0xcf   :  { %v191_v5 = vpop.xlane.xlu0 %190 }
  0xd0   :  { %v192_v6 = vadd.f32 %v191_v5, %v128_v4 }
  0xd2   :  { %193 = vst.msk [vmem:[#allocation3] sm:$0x3] %vm53_vm0, %v192_v6 }
  0xd5   :  { %v197_v7 = vld [vmem:[#allocation2] sm:$0x3] }
  0xd6   :  { %198 = vst.msk [vmem:[%s341_s2] sm:$0x3] %vm53_vm0, %v197_v7 }
  0xd9   :  { %v199_v8 = vld [vmem:[#allocation3] sm:$0x3] }
  0xda   :  { %200 = vst.msk [vmem:[%s342_s3] sm:$0x3] %vm53_vm0, %v199_v8 }
  0xdb   :  { %209 = vsyncpa [#allocation5], 1 }
  0xdc   :  { %210 = vsyncpa [#allocation7], 1 }

</bundles_post_ra>
